<compile_context>
chip_gen: v7x
topology: tpu7x:2x2x1
jax: 0.10.0
libtpu: 0.0.40
codegen_flags: <defaults>
</compile_context>

<pallas_src>
import functools

import jax
import jax.numpy as jnp
from jax import lax
from jax.experimental import pallas as pl
from jax.experimental.pallas import tpu as pltpu


def _ifv_kernel(fs_ref, ft_ref, tgt_ref, o_ref, *, num_classes):
    fs = fs_ref[0]          # (C, HW)  student features, native dtype (f32 or bf16)
    ft = ft_ref[0]          # (C, HW)  teacher features
    tgt = tgt_ref[0]        # (1, HW)  int32 labels, lane-dense

    feat_dtype = fs.dtype
    f32 = jnp.float32

    # One-hot mask: classes on sublanes, pixels on lanes.  M[c, p] = (label_p == c).
    cls = lax.broadcasted_iota(jnp.int32, (num_classes, 1), 0)          # (NC, 1)
    m_f32 = (tgt == cls).astype(f32)                                    # (NC, HW)
    m_mm = m_f32.astype(feat_dtype)                                     # matmul operand

    # Pixels whose label is outside [0, NC) keep their own feature as the "center",
    # so sim_S == sim_T and they contribute 0 to the MSE: cheap range-check mask.
    valid = jnp.logical_and(tgt >= 0, tgt < num_classes)                # (1, HW) bool

    # Per-class pixel counts: plain lane reduce (no (NC,1) matmul).
    counts = jnp.sum(m_f32, axis=1, keepdims=True)                      # (NC, 1)
    inv_counts = pl.reciprocal(counts + 1e-6, approx=True)              # EUP, (NC, 1)

    # Per-class channel sums on the MXU, "NT" form (contract pixels on both lane axes).
    dn_nt = (((1,), (1,)), ((), ()))
    sums_s = lax.dot_general(m_mm, fs, dn_nt, preferred_element_type=f32)   # (NC, C)
    sums_t = lax.dot_general(m_mm, ft, dn_nt, preferred_element_type=f32)   # (NC, C)

    means_s = sums_s * inv_counts                                       # (NC, C) f32
    means_t = sums_t * inv_counts

    # Squared norms of the class centers (cross-lane reduce over C of a 19-row tile).
    cn2_s = jnp.sum(means_s * means_s, axis=1, keepdims=True)           # (NC, 1)
    cn2_t = jnp.sum(means_t * means_t, axis=1, keepdims=True)

    # Per-pixel <f_p, center_p> without materializing any (C, HW) center tensor:
    # D[c, p] = mean_c . f_p  ("NN" MXU form), then select the pixel's class via M.
    dn_nn = (((1,), (0,)), ((), ()))
    d_s = lax.dot_general(means_s.astype(feat_dtype), fs, dn_nn,
                          preferred_element_type=f32)                   # (NC, HW)
    d_t = lax.dot_general(means_t.astype(feat_dtype), ft, dn_nn,
                          preferred_element_type=f32)                   # (NC, HW)

    dot_s = jnp.sum(m_f32 * d_s, axis=0, keepdims=True)                 # (1, HW)
    dot_t = jnp.sum(m_f32 * d_t, axis=0, keepdims=True)
    c2_s = jnp.sum(m_f32 * cn2_s, axis=0, keepdims=True)                # (1, HW)
    c2_t = jnp.sum(m_f32 * cn2_t, axis=0, keepdims=True)

    # Per-pixel feature squared norms (elementwise square + sublane reduce).
    fs32 = fs.astype(f32)
    ft32 = ft.astype(f32)
    fn2_s = jnp.sum(fs32 * fs32, axis=0, keepdims=True)                 # (1, HW)
    fn2_t = jnp.sum(ft32 * ft32, axis=0, keepdims=True)

    # Cosine similarity with squared norms + one rsqrt (eps^2 ~ PyTorch eps=1e-8).
    sim_s = dot_s * lax.rsqrt(jnp.maximum(fn2_s * c2_s, 1e-16))
    sim_t = dot_t * lax.rsqrt(jnp.maximum(fn2_t * c2_t, 1e-16))

    diff = jnp.where(valid, sim_s - sim_t, 0.0)                         # (1, HW)
    sq = jnp.sum(diff * diff)                                           # partial SSE

    o_ref[...] = jnp.zeros_like(o_ref) + sq                             # per-batch output


def criterion_ifv(preds_S, preds_T, target, num_classes=19):
    """preds_S, preds_T: (B, C, H, W); target: (B, h, w) int labels. Returns scalar loss."""
    B, C, H, W = preds_S.shape
    h, w = target.shape[1], target.shape[2]
    HW = H * W

    # nn.Upsample(size=(H, W), mode='nearest'): src = floor(dst * in / out), exact in ints.
    ri = (jnp.arange(H) * h) // H
    ci = (jnp.arange(W) * w) // W
    tgt_up = target.astype(jnp.int32)[:, ri][:, :, ci]                  # (B, H, W) int32
    tgt = tgt_up.reshape(B, 1, HW)                                      # lane-dense labels

    # NCHW -> (B, C, HW): contiguous reshape, no transpose, no dtype change.
    fs = preds_S.reshape(B, C, HW)
    ft = preds_T.reshape(B, C, HW)

    # Raise the scoped-VMEM limit when the per-batch slabs need it (capped for v7x's 64 MiB).
    isz = fs.dtype.itemsize
    nc8 = ((num_classes + 7) // 8) * 8
    vmem_est = (2 * 2 * C * HW * isz        # double-buffered feature slabs (S and T)
                + 2 * 8 * HW * 4            # double-buffered target row (sublane-padded)
                + 2 * C * HW * 4            # f32 temporaries (squares / casts)
                + 6 * nc8 * HW * 4          # one-hot + per-pixel-dot intermediates
                + (1 << 20))
    vmem_limit = int(min(64 * 1024 * 1024, max(32 * 1024 * 1024, vmem_est)))

    kernel = functools.partial(_ifv_kernel, num_classes=num_classes)

    partial = pl.pallas_call(
        kernel,
        out_shape=jax.ShapeDtypeStruct((B, 1, 1), jnp.float32),
        grid_spec=pltpu.PrefetchScalarGridSpec(
            num_scalar_prefetch=0,
            grid=(B,),
            in_specs=[
                pl.BlockSpec((1, C, HW), lambda b: (b, 0, 0)),
                pl.BlockSpec((1, C, HW), lambda b: (b, 0, 0)),
                pl.BlockSpec((1, 1, HW), lambda b: (b, 0, 0)),
            ],
            out_specs=pl.BlockSpec((1, 1, 1), lambda b: (b, 0, 0)),
        ),
        compiler_params=pltpu.CompilerParams(
            dimension_semantics=("parallel",),      # batch steps are independent (v7x megacore)
            vmem_limit_bytes=vmem_limit,
        ),
    )(fs, ft, tgt)

    return jnp.sum(partial) / float(B * H * W)


def _reference_ifv(preds_S, preds_T, target, num_classes):
    """Pure-JAX mirror of the PyTorch CriterionIFV forward (for correctness check)."""
    B, C, H, W = preds_S.shape
    h, w = target.shape[1], target.shape[2]
    ri = (jnp.arange(H) * h) // H
    ci = (jnp.arange(W) * w) // W
    tar = target.astype(jnp.float32)[:, ri][:, :, ci][:, None]          # (B,1,H,W)
    pS = preds_S.astype(jnp.float32)
    pT = preds_T.astype(jnp.float32)
    cS, cT = pS, pT
    for i in range(num_classes):
        m = (tar == float(i)).astype(jnp.float32)                       # (B,1,H,W)
        denom = m.sum((-2, -1)) + 1e-6                                  # (B,1)
        mS = (m * pS).sum((-2, -1)) / denom                             # (B,C)
        mT = (m * pT).sum((-2, -1)) / denom
        cS = (1 - m) * cS + m * mS[:, :, None, None]
        cT = (1 - m) * cT + m * mT[:, :, None, None]

    def cos(a, b):
        num = (a * b).sum(1)
        na = jnp.sqrt((a * a).sum(1))
        nb = jnp.sqrt((b * b).sum(1))
        return num / jnp.maximum(na * nb, 1e-8)

    return jnp.mean((cos(pS, cS) - cos(pT, cT)) ** 2)


if __name__ == "__main__":
    key = jax.random.PRNGKey(0)
    k1, k2, k3 = jax.random.split(key, 3)

    B, C, H, W = 2, 32, 16, 16
    h, w = 8, 8
    num_classes = 19

    preds_S = jax.random.normal(k1, (B, C, H, W), dtype=jnp.float32)
    preds_T = jax.random.normal(k2, (B, C, H, W), dtype=jnp.float32)
    target = jax.random.randint(k3, (B, h, w), 0, num_classes, dtype=jnp.int32)
    # include "ignore" labels outside [0, num_classes): those pixels keep their own feature
    target = target.at[:, 0, 0].set(255)

    loss = criterion_ifv(preds_S, preds_T, target, num_classes=num_classes)
    loss = jax.block_until_ready(loss)
    assert loss.shape == () and bool(jnp.isfinite(loss))

    ref = _reference_ifv(preds_S, preds_T, target, num_classes)
    assert jnp.allclose(loss, ref, rtol=5e-2, atol=1e-3), (float(loss), float(ref))
    print("KERNEL_OK")
</pallas_src>

<mosaic_0001>
module attributes {stable_mosaic.version = 11 : i64} {
  func.func @_ifv_kernel(%arg0: i32, %arg1: memref<1x32x256xf32, #tpu.memory_space<vmem>>, %arg2: memref<1x32x256xf32, #tpu.memory_space<vmem>>, %arg3: memref<1x1x256xi32, #tpu.memory_space<vmem>>, %arg4: memref<1x1x1xf32, #tpu.memory_space<vmem>>) attributes {dimension_semantics = [#tpu.dimension_semantics<parallel>], iteration_bounds = array<i64: 2>, scalar_prefetch = 0 : i64, scratch_operands = 0 : i64, tpu.core_type = #tpu.core_type<tc>, window_params = [{transform_indices = @transform_0, window_bounds = array<i64: 1, 32, 256>}, {transform_indices = @transform_1, window_bounds = array<i64: 1, 32, 256>}, {transform_indices = @transform_2, window_bounds = array<i64: 1, 1, 256>}, {transform_indices = @transform_3, window_bounds = array<i64: 1, 1, 1>}]} {
    %c0 = arith.constant 0 : index
    %c0_0 = arith.constant 0 : index
    %c0_1 = arith.constant 0 : index
    %0 = vector.load %arg1[%c0, %c0_0, %c0_1] : memref<1x32x256xf32, #tpu.memory_space<vmem>>, vector<1x32x256xf32>
    %1 = vector.shape_cast %0 : vector<1x32x256xf32> to vector<32x256xf32>
    %c0_2 = arith.constant 0 : index
    %c0_3 = arith.constant 0 : index
    %c0_4 = arith.constant 0 : index
    %2 = vector.load %arg2[%c0_2, %c0_3, %c0_4] : memref<1x32x256xf32, #tpu.memory_space<vmem>>, vector<1x32x256xf32>
    %3 = vector.shape_cast %2 : vector<1x32x256xf32> to vector<32x256xf32>
    %c0_5 = arith.constant 0 : index
    %c0_6 = arith.constant 0 : index
    %c0_7 = arith.constant 0 : index
    %4 = vector.load %arg3[%c0_5, %c0_6, %c0_7] : memref<1x1x256xi32, #tpu.memory_space<vmem>>, vector<1x1x256xi32>
    %5 = vector.shape_cast %4 : vector<1x1x256xi32> to vector<1x256xi32>
    %6 = tpu.iota {dimensions = array<i32: 0>} : vector<19x1xi32>
    %7 = vector.broadcast %5 : vector<1x256xi32> to vector<19x256xi32>
    %8 = vector.broadcast %6 : vector<19x1xi32> to vector<19x256xi32>
    %9 = arith.cmpi eq, %7, %8 : vector<19x256xi32>
    %10 = arith.extui %9 : vector<19x256xi1> to vector<19x256xi32>
    %11 = arith.sitofp %10 : vector<19x256xi32> to vector<19x256xf32>
    %c0_i32 = arith.constant 0 : i32
    %12 = vector.broadcast %c0_i32 : i32 to vector<1x256xi32>
    %13 = arith.cmpi sge, %5, %12 : vector<1x256xi32>
    %c19_i32 = arith.constant 19 : i32
    %14 = vector.broadcast %c19_i32 : i32 to vector<1x256xi32>
    %15 = arith.cmpi slt, %5, %14 : vector<1x256xi32>
    %16 = arith.andi %13, %15 : vector<1x256xi1>
    %cst = arith.constant dense<0.000000e+00> : vector<19xf32>
    %17 = vector.multi_reduction <add>, %11, %cst [1] : vector<19x256xf32> to vector<19xf32>
    %18 = vector.shape_cast %17 : vector<19xf32> to vector<19x1xf32>
    %cst_8 = arith.constant 9.99999997E-7 : f32
    %19 = vector.broadcast %cst_8 : f32 to vector<19x1xf32>
    %20 = arith.addf %18, %19 : vector<19x1xf32>
    %21 = tpu.reciprocal %20 {approx = true} : vector<19x1xf32> -> vector<19x1xf32>
    %cst_9 = arith.constant dense<0.000000e+00> : vector<19x32xf32>
    %22 = tpu.matmul %11, %1, %cst_9 {dimension_numbers = #tpu.dot_dimension_numbers<[1], [1], [0], [0], [0, 0, 1, 0], [], []>} : vector<19x256xf32>, vector<32x256xf32>, vector<19x32xf32> -> vector<19x32xf32>
    %cst_10 = arith.constant dense<0.000000e+00> : vector<19x32xf32>
    %23 = tpu.matmul %11, %3, %cst_10 {dimension_numbers = #tpu.dot_dimension_numbers<[1], [1], [0], [0], [0, 0, 1, 0], [], []>} : vector<19x256xf32>, vector<32x256xf32>, vector<19x32xf32> -> vector<19x32xf32>
    %24 = vector.broadcast %21 : vector<19x1xf32> to vector<19x32xf32>
    %25 = arith.mulf %22, %24 : vector<19x32xf32>
    %26 = vector.broadcast %21 : vector<19x1xf32> to vector<19x32xf32>
    %27 = arith.mulf %23, %26 : vector<19x32xf32>
    %28 = arith.mulf %25, %25 : vector<19x32xf32>
    %cst_11 = arith.constant dense<0.000000e+00> : vector<19xf32>
    %29 = vector.multi_reduction <add>, %28, %cst_11 [1] : vector<19x32xf32> to vector<19xf32>
    %30 = vector.shape_cast %29 : vector<19xf32> to vector<19x1xf32>
    %31 = arith.mulf %27, %27 : vector<19x32xf32>
    %cst_12 = arith.constant dense<0.000000e+00> : vector<19xf32>
    %32 = vector.multi_reduction <add>, %31, %cst_12 [1] : vector<19x32xf32> to vector<19xf32>
    %33 = vector.shape_cast %32 : vector<19xf32> to vector<19x1xf32>
    %cst_13 = arith.constant dense<0.000000e+00> : vector<19x256xf32>
    %34 = tpu.matmul %25, %1, %cst_13 {dimension_numbers = #tpu.dot_dimension_numbers<[1], [0], [0], [1], [0, 0, 1, 1], [], []>} : vector<19x32xf32>, vector<32x256xf32>, vector<19x256xf32> -> vector<19x256xf32>
    %cst_14 = arith.constant dense<0.000000e+00> : vector<19x256xf32>
    %35 = tpu.matmul %27, %3, %cst_14 {dimension_numbers = #tpu.dot_dimension_numbers<[1], [0], [0], [1], [0, 0, 1, 1], [], []>} : vector<19x32xf32>, vector<32x256xf32>, vector<19x256xf32> -> vector<19x256xf32>
    %36 = arith.mulf %11, %34 : vector<19x256xf32>
    %cst_15 = arith.constant dense<0.000000e+00> : vector<256xf32>
    %37 = vector.multi_reduction <add>, %36, %cst_15 [0] : vector<19x256xf32> to vector<256xf32>
    %38 = vector.shape_cast %37 : vector<256xf32> to vector<1x256xf32>
    %39 = arith.mulf %11, %35 : vector<19x256xf32>
    %cst_16 = arith.constant dense<0.000000e+00> : vector<256xf32>
    %40 = vector.multi_reduction <add>, %39, %cst_16 [0] : vector<19x256xf32> to vector<256xf32>
    %41 = vector.shape_cast %40 : vector<256xf32> to vector<1x256xf32>
    %42 = vector.broadcast %30 : vector<19x1xf32> to vector<19x256xf32>
    %43 = arith.mulf %11, %42 : vector<19x256xf32>
    %cst_17 = arith.constant dense<0.000000e+00> : vector<256xf32>
    %44 = vector.multi_reduction <add>, %43, %cst_17 [0] : vector<19x256xf32> to vector<256xf32>
    %45 = vector.shape_cast %44 : vector<256xf32> to vector<1x256xf32>
    %46 = vector.broadcast %33 : vector<19x1xf32> to vector<19x256xf32>
    %47 = arith.mulf %11, %46 : vector<19x256xf32>
    %cst_18 = arith.constant dense<0.000000e+00> : vector<256xf32>
    %48 = vector.multi_reduction <add>, %47, %cst_18 [0] : vector<19x256xf32> to vector<256xf32>
    %49 = vector.shape_cast %48 : vector<256xf32> to vector<1x256xf32>
    %50 = arith.mulf %1, %1 : vector<32x256xf32>
    %cst_19 = arith.constant dense<0.000000e+00> : vector<256xf32>
    %51 = vector.multi_reduction <add>, %50, %cst_19 [0] : vector<32x256xf32> to vector<256xf32>
    %52 = vector.shape_cast %51 : vector<256xf32> to vector<1x256xf32>
    %53 = arith.mulf %3, %3 : vector<32x256xf32>
    %cst_20 = arith.constant dense<0.000000e+00> : vector<256xf32>
    %54 = vector.multi_reduction <add>, %53, %cst_20 [0] : vector<32x256xf32> to vector<256xf32>
    %55 = vector.shape_cast %54 : vector<256xf32> to vector<1x256xf32>
    %56 = arith.mulf %52, %45 : vector<1x256xf32>
    %cst_21 = arith.constant 1.000000e-16 : f32
    %57 = vector.broadcast %cst_21 : f32 to vector<1x256xf32>
    %58 = arith.maximumf %56, %57 : vector<1x256xf32>
    %59 = math.rsqrt %58 : vector<1x256xf32>
    %60 = arith.mulf %38, %59 : vector<1x256xf32>
    %61 = arith.mulf %55, %49 : vector<1x256xf32>
    %cst_22 = arith.constant 1.000000e-16 : f32
    %62 = vector.broadcast %cst_22 : f32 to vector<1x256xf32>
    %63 = arith.maximumf %61, %62 : vector<1x256xf32>
    %64 = math.rsqrt %63 : vector<1x256xf32>
    %65 = arith.mulf %41, %64 : vector<1x256xf32>
    %66 = arith.subf %60, %65 : vector<1x256xf32>
    %cst_23 = arith.constant 0.000000e+00 : f32
    %67 = vector.broadcast %cst_23 : f32 to vector<1x256xf32>
    %68 = arith.select %16, %66, %67 : vector<1x256xi1>, vector<1x256xf32>
    %69 = arith.mulf %68, %68 : vector<1x256xf32>
    %70 = vector.shape_cast %69 : vector<1x256xf32> to vector<1x1x256xf32>
    %cst_24 = arith.constant dense<0.000000e+00> : vector<1xf32>
    %71 = vector.multi_reduction <add>, %70, %cst_24 [1, 2] : vector<1x1x256xf32> to vector<1xf32>
    %72 = vector.shape_cast %71 : vector<1xf32> to vector<1x1x1xf32>
    %73 = vector.extract %72[0, 0, 0] : f32 from vector<1x1x1xf32>
    %cst_25 = arith.constant 0.000000e+00 : f32
    %74 = vector.broadcast %cst_25 : f32 to vector<1x1x1xf32>
    %75 = vector.broadcast %73 : f32 to vector<1x1x1xf32>
    %76 = arith.addf %74, %75 : vector<1x1x1xf32>
    %c0_26 = arith.constant 0 : index
    %c0_27 = arith.constant 0 : index
    %c0_28 = arith.constant 0 : index
    %77 = vector.load %arg4[%c0_26, %c0_27, %c0_28] : memref<1x1x1xf32, #tpu.memory_space<vmem>>, vector<1x1x1xf32>
    tpu.vector_store %arg4[%c0_26, %c0_27, %c0_28], %76 {strides = array<i32>} : memref<1x1x1xf32, #tpu.memory_space<vmem>>, vector<1x1x1xf32>,
    return
  }
  func.func @transform_0(%arg0: i32) -> (i32, i32, i32) {
    %c0_i32 = arith.constant 0 : i32
    %c0_i32_0 = arith.constant 0 : i32
    %c0_i32_1 = arith.constant 0 : i32
    return %arg0, %c0_i32, %c0_i32_0 : i32, i32, i32
  }
  func.func @transform_1(%arg0: i32) -> (i32, i32, i32) {
    %c0_i32 = arith.constant 0 : i32
    %c0_i32_0 = arith.constant 0 : i32
    %c0_i32_1 = arith.constant 0 : i32
    return %arg0, %c0_i32, %c0_i32_0 : i32, i32, i32
  }
  func.func @transform_2(%arg0: i32) -> (i32, i32, i32) {
    %c0_i32 = arith.constant 0 : i32
    %c0_i32_0 = arith.constant 0 : i32
    %c0_i32_1 = arith.constant 0 : i32
    return %arg0, %c0_i32, %c0_i32_0 : i32, i32, i32
  }
  func.func @transform_3(%arg0: i32) -> (i32, i32, i32) {
    %c0_i32 = arith.constant 0 : i32
    %c0_i32_0 = arith.constant 0 : i32
    %c0_i32_1 = arith.constant 0 : i32
    return %arg0, %c0_i32, %c0_i32_0 : i32, i32, i32
  }
}

</mosaic_0001>

<bundles_post_ra>
// kernel: tpu_custom_call.1
= control target key start
LH: loop header
LB: loop body
LE: loop exit
PB: predicated region body
PF: predicated region fallthrough
CT: control target
= control target key end

     0   :  { %8 = vsyncpa [#allocation3], 0  ;;  %s1631_s0 = inlined_call_operand.hbm [shape: f32[2,32,256], index: 0, kind: input, shape index: {}]   ;;  %s1632_s1 = inlined_call_operand.hbm [shape: f32[2,32,256], index: 1, kind: input, shape index: {}]   ;;  %s1633_s2 = inlined_call_operand.vmem [shape: s32[2,1,256], index: 2, kind: input, shape index: {}]   ;;  %s1634_s3 = inlined_call_operand.vmem [shape: f32[2,1,1], index: 3, kind: output, shape index: {}]  }
   0x1   :  { %10 = vsyncpa [#allocation3 + $0x1], 0 }
   0x2   :  { %11 = vsyncpa [#allocation5], 0 }
   0x3   :  { %13 = vsyncpa [#allocation5 + $0x1], 0  ;;  %s1261_s12 = smov 0   ;;  %s1263_s13 = smov 0  }
   0x4   :  { %s1265_s14 = smov 0   ;;  %s1267_s15 = smov 0  }
   0x5 LB: > { %s1280_s16 = sadd.s32 4294967295, %s1232_s15   ;;  %s1283_s17 = sadd.s32 1, %s1232_s15   ;;  %s1232_s15 = sphi %s1267_s15, %s1644_s15   ;;  %s1228_s14 = sphi %s1265_s14, %s1643_s14   ;;  %s1224_s13 = sphi %s1263_s13, %s1642_s13   ;;  %s1220_s12 = sphi %s1261_s12, %s1641_s12  }
   0x6   : > { %s23_s18 = ssub.s32 %s1232_s15, %s1283_s17  ;;  %s26_s19 = sadd.s32 1, %s1228_s14 }
   0x7   : > { %p24_p0 = scmp.eq.s32.totalorder %s23_s18, 0  ;;  %p33_p1 = scmp.ne.s32.totalorder %s1228_s14, %s1224_s13 }
   0x8   : > { %p34_p2 = scmp.eq.s32.totalorder %s1232_s15, 0  ;;  %p39_p3 = scmp.ne.s32.totalorder %s1224_s13, %s1220_s12 }
   0x9   : > { %s1293_s20 = scalar_select %p24_p0, %s1228_s14, %s26_s19  }
   0xa   : > { %p35_p4 = por %p34_p2, %p33_p1  ;;  %p40_p5 = scmp.eq.s32.totalorder %s1280_s16, 0 }
   0xb   : > { %p1082_p6 = scmp.lt.s32.totalorder %s1232_s15, 2  ;;  %s1302_s22 = sand.u32 1, %s1228_s14  }
   0xc   : > { %p1297_p7 = por %p40_p5, %p39_p3  ;;  %s999_s23 = sshll.u32 %s1302_s22, 6 }
   0xd   : > { %s1035_s24 = sshll.u32 %s1232_s15, 10  ;;  %s145_s28 = scalar_lea.vmem [#allocation2], %s999_s23 }
   0xe   : > { %s1636_s21 = scalar_select %p1297_p7, 1, 0 }
   0xf   : > { %s1311_s27 = scalar_lea.hbm %s1631_s0, %s1035_s24  ;;  %s152_s29 = sshll.u32 %s145_s28, 4  ;;  %s1315_s29 = int_to_ptr.vmem [resolvable:$true] %s152_s29 }
  0x10   : > { %p1317_p8 = pnand %p1082_p6, %p35_p4  ;;  %s142_s4 = scalar_lea.sflag [#allocation3], %s1302_s22 }
  0x11   : > { %s1134_s5 = scalar_lea.hbm %s1311_s27, 1024  ;;  %s1139_s8 = scalar_lea.hbm %s1631_s0, 2048 }
  0x12   : > { %p1135_p10 = scmp.ne.s32.totalorder %s1311_s27, %s1134_s5  ;;  %p1136_p11 = pneg %p1317_p8 }
  0x13   : > { %p1140_p0 = scmp.lt.u32.totalorder %s1311_s27, %s1631_s0  ;;  %p1141_p1 = scmp.lt.u32.totalorder %s1139_s8, %s1134_s5 }
  0x14   : > { %p1137_p12 = pnand %p1136_p11, %p1135_p10  ;;  %p1143_p3 = scmp.lt.u32.totalorder %s1134_s5, %s1311_s27 }
  0x15   : > { %p1142_p2 = por %p1141_p1, %p1140_p0 }
  0x16   : > { %p1138_p13 = pneg %p1137_p12 }
  0x17   : > { %p1144_p4 = por %p1143_p3, %p1142_p2 }
  0x19   : > { %p1145_p5 = pnand %p1144_p4, %p1138_p13 }
  0x1b   : > { %1148 = shalt.err (!%p1145_p5)
}
  0x1c   : > { %s1149_s11 = scalar_lea.vmem %s1315_s29, 1024  ;;  %s1234_s12 = smov [#allocation2]  }
  0x1d   : > { %p1150_p6 = scmp.ne.s32.totalorder %s1315_s29, %s1149_s11  ;;  %s1154_s18 = sshll.u32 %s1234_s12, 4  ;;  %s1155_s18 = int_to_ptr.vmem [resolvable:$false] %s1154_s18 }
  0x1e   : > { %s1156_s19 = scalar_lea.vmem %s1155_s18, 2048  ;;  %p1157_p9 = scmp.lt.s32.totalorder %s1315_s29, %s1155_s18 }
  0x1f   : > { %p1152_p10 = pnand %p1150_p6, %p1136_p11  ;;  %p1158_p0 = scmp.lt.s32.totalorder %s1156_s19, %s1149_s11 }
  0x21   : > { %p1153_p12 = pneg %p1152_p10  ;;  %p1159_p1 = por %p1158_p0, %p1157_p9 }
  0x23   : > { %p1160_p2 = pnand %p1159_p1, %p1153_p12 }
  0x25   : > { %1163 = shalt.err (!%p1160_p2)
}
  0x26   : > { %s1235_s25 = smov 256   ;;  %s1236_s26 = smov 16  }
  0x27   : > { %1078 = dma.hbm_to_vmem [thread:$0]  (!%p1317_p8), %s1311_s27, 1024, %s1315_s29, %s142_s4, %s1235_s25, %s1235_s25, %s1236_s26  }
  0x28   : > { %p188_p9 = scmp.lt.s32.totalorder %s1232_s15, 3  ;;  %s1359_s6 = scalar_lea.hbm %s1632_s1, %s1035_s24 }
  0x29   : > { %p1638_p13 = scmp.ge.s32.totalorder %s1232_s15, 1  ;;  %s166_s8 = scalar_lea.vmem [#allocation4], %s999_s23 }
  0x2a   : > { %s173_s9 = sshll.u32 %s166_s8, 4  ;;  %s163_s27 = scalar_lea.sflag [#allocation5], %s1302_s22  ;;  %s1369_s9 = int_to_ptr.vmem [resolvable:$true] %s173_s9 }
  0x2b   : > { %p1363_p3 = pnand %p1638_p13, %p188_p9  ;;  %s1164_s29 = scalar_lea.hbm %s1359_s6, 1024 }
  0x2c   : > { %p1165_p4 = scmp.ne.s32.totalorder %s1359_s6, %s1164_s29  ;;  %s1169_s4 = scalar_lea.hbm %s1632_s1, 2048 }
  0x2d   : > { %p1170_p10 = scmp.lt.u32.totalorder %s1359_s6, %s1632_s1  ;;  %p1171_p12 = scmp.lt.u32.totalorder %s1169_s4, %s1164_s29 }
  0x2e   : > { %p1167_p5 = pnand %p1165_p4, %p1136_p11  ;;  %p1173_p1 = scmp.lt.u32.totalorder %s1164_s29, %s1359_s6 }
  0x2f   : > { %p1172_p0 = por %p1171_p12, %p1170_p10 }
  0x30   : > { %p1168_p6 = pneg %p1167_p5 }
  0x31   : > { %p1174_p2 = por %p1173_p1, %p1172_p0 }
  0x33   : > { %p1175_p9 = pnand %p1174_p2, %p1168_p6 }
  0x35   : > { %1178 = shalt.err (!%p1175_p9)
}
  0x36   : > { %s1179_s23 = scalar_lea.vmem %s1369_s9, 1024  ;;  %s1237_s12 = smov [#allocation4]  }
  0x37   : > { %p1180_p13 = scmp.ne.s32.totalorder %s1369_s9, %s1179_s23  ;;  %s1184_s18 = sshll.u32 %s1237_s12, 4  ;;  %s1185_s18 = int_to_ptr.vmem [resolvable:$false] %s1184_s18 }
  0x38   : > { %s1186_s19 = scalar_lea.vmem %s1185_s18, 2048  ;;  %p1187_p7 = scmp.lt.s32.totalorder %s1369_s9, %s1185_s18 }
  0x39   : > { %p1182_p4 = pnand %p1180_p13, %p1136_p11  ;;  %p1188_p10 = scmp.lt.s32.totalorder %s1186_s19, %s1179_s23 }
  0x3b   : > { %p1183_p5 = pneg %p1182_p4  ;;  %p1189_p12 = por %p1188_p10, %p1187_p7 }
  0x3d   : > { %p1190_p0 = pnand %p1189_p12, %p1183_p5 }
  0x3f   : > { %1193 = shalt.err (!%p1190_p0)
}
  0x40   : > { %1081 = dma.hbm_to_vmem [thread:$0]  (!%p1317_p8), %s1359_s6, 1024, %s1369_s9, %s163_s27, %s1235_s25, %s1235_s25, %s1236_s26  }
  0x41   : > { %192 = sbr.rel (%p1363_p3) target bundleno = 772 (0x304), region = 32  ;;  %s194_s28 = sand.u32 (!%p1363_p3), 1, %s1224_s13  }
  0x42   : > { %s1006_s5 = sshll.u32 (!%p1363_p3), %s194_s28, 6  ;;  %s195_s8 = scalar_lea.sflag (!%p1363_p3), [#allocation3], %s194_s28 }
  0x43   : > { %s1403_s29 = scalar_lea.vmem (!%p1363_p3), [#allocation2], %s1006_s5  ;;  %p1640_p7 = scmp.ne.s32.totalorder (!%p1363_p3), %s1636_s21, 0 }
  0x48   : > { %1211 = dma.done.wait (%p1640_p7), %s195_s8, 1024  }
  0x49   : > { %1213 = vsyncadd (%p1640_p7), %s195_s8, 4294966272  ;;  %s204_s22 = scalar_lea.sflag [#allocation5], %s194_s28  ;;  %s1409_s30 = scalar_lea.vmem [#allocation4], %s1006_s5 }
  0x4a   : > { %1215 = dma.done.wait (%p1640_p7), %s204_s22, 1024  }
  0x4b   : > { %1217 = vsyncadd (%p1640_p7), %s204_s22, 4294966272  ;;  %p237_p8 = scmp.lt.s32.totalorder %s1280_s16, 1  ;;  %v261_v0 = vlaneseq  ;;  %v245_v2 = vld [vmem:[%s1403_s29 + $0x8] sm:$0xff]  ;;  %v247_v3 = vld [vmem:[%s1403_s29 + $0x18] sm:$0xff]  ;;  %v1238_v60 = vmov 1.0   ;;  %v1239_v62 = vmov 0.0  }
  0x4c   : > { %v253_v4 = vld [vmem:[%s1409_s30 + $0x8] sm:$0xff]  ;;  %v1427_v7 = vpack.c.bf16 %v247_v3, %v245_v2  ;;  %v785_v8 = vmul.f32 %v245_v2, %v245_v2  ;;  %v787_v9 = vmul.f32 %v247_v3, %v247_v3  ;;  %v255_v10 = vld [vmem:[%s1409_s30 + $0x18] sm:$0xff]  ;;  %v244_v12 = vld [vmem:[%s1403_s29] sm:$0xff]  ;;  %vm300_vm5 = vcmask 1042432  }
  0x4d   : > { %s1646_s16 = smov (!%p237_p8, %s1280_s16), 1  ;;  %v1419_v1 = vshrl.u32 %v261_v0, 7  ;;  %v811_v11 = vmul.f32 %v253_v4, %v253_v4  ;;  %v246_v13 = vld [vmem:[%s1403_s29 + $0x10] sm:$0xff]  ;;  %v1432_v14 = vpack.c.bf16 %v255_v10, %v253_v4  ;;  %v813_v15 = vmul.f32 %v255_v10, %v255_v10  ;;  %v252_v18 = vld [vmem:[%s1409_s30] sm:$0xff]  ;;  %v249_v20 = vld [vmem:[%s1403_s29 + $0x28] sm:$0xff] }
  0x4e   : > { %s1008_s25 = sshll.u32 %s1646_s16, 1  ;;  %v1434_v16 = vpack.c.bf16 %v246_v13, %v244_v12  ;;  %v784_v17 = vmul.f32 %v244_v12, %v244_v12  ;;  %v254_v19 = vld [vmem:[%s1409_s30 + $0x10] sm:$0xff]  ;;  %1038 = vmatprep.subr.bf16.mxu0 %v1427_v7  ;;  %v801_v21 = vadd.f32 %v787_v9, %v785_v8  ;;  %v786_v22 = vmul.f32 %v246_v13, %v246_v13  ;;  %v251_v25 = vld [vmem:[%s1403_s29 + $0x38] sm:$0xff]  ;;  %v257_v26 = vld [vmem:[%s1409_s30 + $0x28] sm:$0xff]  ;;  %s243_s27 = scalar_lea.vmem %s1634_s3, %s1646_s16 }
  0x4f   : > { %v271_v5 = vsub.s32 1, %v1419_v1  ;;  %v267_v6 = vsub.s32 0, %v1419_v1  ;;  %s240_s6 = scalar_lea.vmem %s1633_s2, %s1008_s25  ;;  %v1443_v23 = vpack.c.bf16 %v254_v19, %v252_v18  ;;  %v810_v24 = vmul.f32 %v252_v18, %v252_v18  ;;  %v259_v27 = vld [vmem:[%s1409_s30 + $0x38] sm:$0xff]  ;;  %1046 = vmatprep.subr.bf16.mxu1 %v1432_v14  ;;  %v248_v31 = vld [vmem:[%s1403_s29 + $0x20] sm:$0xff]  ;;  %v250_v32 = vld [vmem:[%s1403_s29 + $0x30] sm:$0xff] }
  0x50   : > { %v827_v28 = vadd.f32 %v813_v15, %v811_v11  ;;  %1040 = vmatpush1.bf16.xpose.msra.mxu0 %v1434_v16  ;;  %v812_v29 = vmul.f32 %v254_v19, %v254_v19  ;;  %v1450_v30 = vpack.c.bf16 %v251_v25, %v249_v20  ;;  %v1455_v33 = vadd.s32 8, %v1419_v1  ;;  %v1460_v38 = vld [vmem:[%s240_s6] sm:$0x3]  ;;  %v258_v43 = vld [vmem:[%s1409_s30 + $0x30] sm:$0xff] }
  0x51   : > { %v792_v34 = vadd.f32 %v786_v22, %v784_v17  ;;  %1048 = vmatpush1.bf16.xpose.msra.mxu1 %v1443_v23  ;;  %v789_v35 = vmul.f32 %v249_v20, %v249_v20  ;;  %v791_v36 = vmul.f32 %v251_v25, %v251_v25  ;;  %v1458_v37 = vpack.c.bf16 %v259_v27, %v257_v26  ;;  %v256_v42 = vld [vmem:[%s1409_s30 + $0x20] sm:$0xff] }
  0x52   : > { %v818_v39 = vadd.f32 %v812_v29, %v810_v24  ;;  %1042 = vmatprep.subr.bf16.mxu0 %v1450_v30  ;;  %v815_v40 = vmul.f32 %v257_v26, %v257_v26  ;;  %v817_v41 = vmul.f32 %v259_v27, %v259_v27  ;;  %v1466_v44 = vadd.s32 16, %v1419_v1 }
  0x53   : > { %v802_v45 = vadd.f32 %v801_v21, %v789_v35  ;;  %1050 = vmatprep.subr.bf16.mxu1 %v1458_v37  ;;  %v1043_v46 = vpack.c.bf16 %v250_v32, %v248_v31  ;;  %v788_v47 = vmul.f32 %v248_v31, %v248_v31  ;;  %v790_v48 = vmul.f32 %v250_v32, %v250_v32 }
  0x54   : > { %v828_v49 = vadd.f32 %v827_v28, %v815_v40  ;;  %v814_v50 = vmul.f32 %v256_v42, %v256_v42  ;;  %v816_v51 = vmul.f32 %v258_v43, %v258_v43  ;;  %v272_v52 = vrot.slane %v1460_v38, %v271_v5 }
  0x55   : > { %v1472_v53 = vadd.f32 %v802_v45, %v791_v36  ;;  %v793_v54 = vadd.f32 %v792_v34, %v788_v47  ;;  %v1051_v55 = vpack.c.bf16 %v258_v43, %v256_v42  ;;  %v268_v56 = vrot.slane %v1460_v38, %v267_v6 }
  0x56   : > { %v1477_v57 = vadd.f32 %v828_v49, %v817_v41  ;;  %v819_v58 = vadd.f32 %v818_v39, %v814_v50  ;;  %vm274_vm0 = vcmp.eq.s32.totalorder %v272_v52, %v1419_v1  ;;  %vm276_vm2 = vcmp.eq.s32.totalorder %v272_v52, %v1455_v33 }
  0x57   : > { %v1480_v59 = vadd.f32 %v793_v54, %v790_v48  ;;  %1015 = vmatprep.mubr.msk.f32.mxu0 %vm274_vm0, %v1238_v60  ;;  %1021 = vmatprep.mubr.msk.f32.mxu1 %vm274_vm0, %v1238_v60  ;;  %vm273_vm1 = vcmp.eq.s32.totalorder %v268_v56, %v1419_v1  ;;  %v1486_v63 = vsel %vm274_vm0, 1.0, %v1239_v62  ;;  %vm275_vm3 = vcmp.eq.s32.totalorder %v268_v56, %v1455_v33 }
  0x58   : > { %1044 = vmatpush1.bf16.xpose.msra.mxu0 %v1043_v46  ;;  %v1483_v61 = vadd.f32 %v819_v58, %v816_v51  ;;  %v1491_v0 = vsel %vm273_vm1, 1.0, %v1239_v62  ;;  %vm278_vm4 = vcmp.eq.s32.totalorder %v272_v52, %v1466_v44  ;;  %v1500_v2 = vsel %vm276_vm2, 1.0, %v1239_v62 }
  0x59   : > { %1052 = vmatpush1.bf16.xpose.msra.mxu1 %v1051_v55  ;;  %1054 = vmatprep.subr.bf16.mxu0 %v1427_v7  ;;  %v1505_v3 = vsel %vm275_vm3, 1.0, %v1239_v62  ;;  %v1510_v4 = vsel %vm278_vm4, 1.0, %v1239_v62  ;;  %vm277_vm6 = vcmp.eq.s32.totalorder %v268_v56, %v1466_v44  ;;  %v294_v7 = vadd.f32 %v1486_v63, %v1491_v0 }
  0x5a   : > { %1062 = vmatprep.subr.bf16.mxu1 %v1432_v14  ;;  %v1519_v8 = vsel %vm277_vm6, 1.0, %v1239_v62  ;;  %v297_v9 = vadd.f32 %v1500_v2, %v1505_v3  ;;  %v302_v11 = vsel %vm300_vm5, %v1510_v4, 0.0  ;;  %vm481_vm7 = vcmask 261120  }
  0x5b   : > { %295 = vadd.xlane.f32.xlu0 %v294_v7  ;;  %v301_v10 = vsel %vm300_vm5, %v1519_v8, 0.0  ;;  %vm488_vm8 = vcmask 256000   ;;  %vm291_vm9 = vcmp.ge.s32.totalorder %v1460_v38, 0  ;;  %vm292_vm10 = vcmp.lt.s32.totalorder %v1460_v38, 19 }
  0x5c   : > { %v303_v12 = vadd.f32 %v302_v11, %v301_v10  ;;  %vm293_vm11 = vmand %vm291_vm9, %vm292_vm10  ;;  %vm885_vm12 = vcmask 1040384   ;;  %vm900_vm13 = vcmask 0  }
  0x5e   : > { %304 = vadd.xlane.f32.xlu1 %v303_v12 }
  0x5f   : > { %1016 = vmatmul.mubr.msk.f32.vlgmr.msra.gmra.mrb[0].mxu0 %vm273_vm1, %v1238_v60  ;;  %298 = vadd.xlane.f32.xlu0 %v297_v9 }
  0x60   : > { %1022 = vmatmul.mubr.msk.f32.vlgmr.msra.gmra.mrb[0].mxu1 %vm273_vm1, %v1238_v60  ;;  %1017 = vmatprep.mubr.msk.f32.mxu0 %vm276_vm2, %v1238_v60 }
  0x61   : > { %1023 = vmatprep.mubr.msk.f32.mxu1 %vm276_vm2, %v1238_v60  ;;  %1056 = vmatpush1.bf16.msra.mxu0 %v1434_v16 }
  0x62   : > { %1064 = vmatpush1.bf16.msra.mxu1 %v1443_v23  ;;  %1058 = vmatprep.subr.bf16.mxu0 %v1450_v30 }
  0x63   : > { %1018 = vmatmul.mubr.msk.f32.gmra.mrb[2].mxu0 %vm275_vm3, %v1238_v60  ;;  %1066 = vmatprep.subr.bf16.mxu1 %v1458_v37 }
  0x64   : > { %1024 = vmatmul.mubr.msk.f32.gmra.mrb[2].mxu1 %vm275_vm3, %v1238_v60  ;;  %1019 = vmatprep.mubr.msk.f32.mxu0 %vm278_vm4, %v1238_v60 }
  0x65   : > { %1025 = vmatprep.mubr.msk.f32.mxu1 %vm278_vm4, %v1238_v60  ;;  %1060 = vmatpush1.bf16.msra.mxu0 %v1043_v46 }
  0x66   : > { %1068 = vmatpush1.bf16.msra.mxu1 %v1051_v55 }
  0x67   : > { %1020 = vmatmul.mubr.msk.f32.gmra.mrb[4].mxu0 %vm277_vm6, %v1238_v60 }
  0x68   : > { %1026 = vmatmul.mubr.msk.f32.gmra.mrb[4].mxu1 %vm277_vm6, %v1238_v60  ;;  %577 = vmatprep.mubr.f32.mxu0 %v1239_v62 }
  0x69   : > { %669 = vmatprep.mubr.f32.mxu1 %v1239_v62 }
  0xe8   : > { %v296_v13 = vpop.xlane.xlu0 %295 }
  0xe9   : > { %v306_v14 = vadd.f32 1e-06, %v296_v13 }
  0xeb   : > { %1120 = vrcp.f32 %v306_v14  ;;  %v305_v17 = vpop.xlane.xlu1 %304 }
  0xec   : > { %v299_v15 = vpop.xlane.xlu0 %298  ;;  %v308_v18 = vadd.f32 1e-06, %v305_v17 }
  0xed   : > { %v307_v16 = vadd.f32 1e-06, %v299_v15 }
  0xef   : > { %1122 = vrcp.f32 %v307_v16 }
  0xf0   : > { %1124 = vrcp.f32 %v308_v18 }
  0xf5   : > { %v1121_v19 = vpop.eup %1120 }
  0xf9   : > { %v1123_v24 = vpop.eup %1122 }
  0xfa   : > { %v1125_v34 = vpop.eup %1124 }
 0x132   : > { %v378_v20 = vpop.f32.mrb[0].mxu0 }
 0x133   : > { %v472_v21 = vmul.f32 %v1121_v19, %v378_v20  ;;  %v458_v22 = vpop.f32.mrb[0].mxu1  ;;  %v380_v23 = vpop.f32.mrb[1].mxu0 }
 0x134   : > { %v475_v25 = vmul.f32 %v1121_v19, %v458_v22  ;;  %v460_v26 = vpop.f32.mrb[1].mxu1 }
 0x135   : > { %1027 = vmatmul.mubr.msk.f32.vlgmr.msra.gmra.mrb[6].mxu0 %vm481_vm7, %v472_v21  ;;  %v478_v27 = vmul.f32 %v472_v21, %v472_v21 }
 0x136   : > { %1030 = vmatmul.mubr.msk.f32.vlgmr.msra.gmra.mrb[6].mxu1 %vm481_vm7, %v475_v25  ;;  %v383_v28 = vpop.f32.mrb[2].mxu0  ;;  %583 = vmatprep.mubr.f32.mxu0 %v1239_v62  ;;  %v492_v33 = vmul.f32 %v475_v25, %v475_v25 }
 0x137   : > { %v473_v29 = vmul.f32 %v1123_v24, %v383_v28  ;;  %v463_v30 = vpop.f32.mrb[2].mxu1  ;;  %v385_v31 = vpop.f32.mrb[3].mxu0  ;;  %675 = vmatprep.mubr.f32.mxu1 %v1239_v62  ;;  %v482_v32 = vsel %vm481_vm7, %v478_v27, 0.0 }
 0x138   : > { %v476_v35 = vmul.f32 %v1123_v24, %v463_v30  ;;  %v465_v36 = vpop.f32.mrb[3].mxu1  ;;  %483 = vadd.xlane.f32.xlu1 %v482_v32  ;;  %v495_v43 = vsel %vm481_vm7, %v492_v33, 0.0  ;;  %v795_v31 = vrot.slane %v1480_v59, 4 }
 0x139   : > { %1028 = vmatmul.mubr.msk.f32.gmra.mrb[8].mxu0 %vm481_vm7, %v473_v29  ;;  %v479_v37 = vmul.f32 %v473_v29, %v473_v29  ;;  %v830_v36 = vrot.slane %v1477_v57, 4 }
 0x13a   : > { %1031 = vmatmul.mubr.msk.f32.gmra.mrb[8].mxu1 %vm481_vm7, %v476_v35  ;;  %v388_v39 = vpop.f32.mrb[4].mxu0  ;;  %589 = vmatprep.mubr.f32.mxu0 %v1239_v62  ;;  %v493_v45 = vmul.f32 %v476_v35, %v476_v35 }
 0x13b   : > { %v474_v40 = vmul.f32 %v1125_v34, %v388_v39  ;;  %v468_v41 = vpop.f32.mrb[4].mxu1  ;;  %v390_v42 = vpop.f32.mrb[5].mxu0  ;;  %681 = vmatprep.mubr.f32.mxu1 %v1239_v62  ;;  %v485_v44 = vsel %vm481_vm7, %v479_v37, 0.0  ;;  %v821_v37 = vrot.slane %v1483_v61, 4 }
 0x13c   : > { %v477_v46 = vmul.f32 %v1125_v34, %v468_v41  ;;  %v470_v47 = vpop.f32.mrb[5].mxu1  ;;  %496 = vadd.xlane.f32.xlu1 %v495_v43  ;;  %486 = vadd.xlane.f32.xlu0 %v485_v44  ;;  %v498_v49 = vsel %vm481_vm7, %v493_v45, 0.0  ;;  %v804_v34 = vrot.slane %v1472_v53, 4  ;;  %v831_v45 = vadd.f32 %v830_v36, %v1477_v57 }
 0x13d   : > { %1029 = vmatmul.mubr.msk.f32.gmra.mrb[10].mxu0 %vm481_vm7, %v474_v40  ;;  %v480_v48 = vmul.f32 %v474_v40, %v474_v40  ;;  %v796_v40 = vadd.f32 %v795_v31, %v1480_v59 }
 0x13e   : > { %1032 = vmatmul.mubr.msk.f32.gmra.mrb[10].mxu1 %vm481_vm7, %v477_v46  ;;  %v494_v51 = vmul.f32 %v477_v46, %v477_v46  ;;  %v805_v43 = vadd.f32 %v804_v34, %v1472_v53  ;;  %v822_v46 = vadd.f32 %v821_v37, %v1483_v61 }
 0x13f   : > { %v489_v50 = vsel %vm488_vm8, %v480_v48, 0.0  ;;  %v797_v48 = vrot.slane %v796_v40, 2 }
 0x140   : > { %499 = vadd.xlane.f32.xlu0 %v498_v49  ;;  %490 = vadd.xlane.f32.xlu1 %v489_v50  ;;  %v501_v52 = vsel %vm488_vm8, %v494_v51, 0.0  ;;  %v806_v51 = vrot.slane %v805_v43, 2 }
 0x144   : > { %502 = vadd.xlane.f32.xlu0 %v501_v52 }
 0x1c5   : > { %v484_v54 = vpop.xlane.xlu1 %483 }
 0x1c6   : > { %v736_v11 = vmul.f32 %v1491_v0, %v484_v54  ;;  %v737_v17 = vmul.f32 %v1486_v63, %v484_v54  ;;  %v832_v54 = vrot.slane %v831_v45, 2 }
 0x1c8   : > { %v833_v53 = vadd.f32 %v832_v54, %v831_v45 }
 0x1c9   : > { %v487_v55 = vpop.xlane.xlu0 %486  ;;  %v497_v56 = vpop.xlane.xlu1 %496 }
 0x1ca   : > { %v738_v9 = vmul.f32 %v1505_v3, %v487_v55  ;;  %v739_v12 = vmul.f32 %v1500_v2, %v487_v55  ;;  %v760_v20 = vmul.f32 %v1491_v0, %v497_v56  ;;  %v761_v22 = vmul.f32 %v1486_v63, %v497_v56 }
 0x1cb   : > { %v823_v55 = vrot.slane %v822_v46, 2 }
 0x1cc   : > { %v742_v18 = vadd.f32 %v738_v9, %v736_v11  ;;  %v751_v23 = vadd.f32 %v739_v12, %v737_v17 }
 0x1cd   : > { %v500_v58 = vpop.xlane.xlu0 %499  ;;  %v491_v60 = vpop.xlane.xlu1 %490  ;;  %v824_v9 = vadd.f32 %v823_v55, %v822_v46 }
 0x1ce   : > { %v740_v62 = vmul.f32 %v1519_v8, %v491_v60  ;;  %v741_v10 = vmul.f32 %v1510_v4, %v491_v60  ;;  %v762_v14 = vmul.f32 %v1505_v3, %v500_v58  ;;  %v763_v19 = vmul.f32 %v1500_v2, %v500_v58 }
 0x1cf   : > { %v798_v58 = vadd.f32 %v797_v48, %v796_v40 }
 0x1d0   : > { %v743_v15 = vsel %vm300_vm5, %v740_v62, 0.0  ;;  %v752_v21 = vsel %vm300_vm5, %v741_v10, 0.0  ;;  %v766_v26 = vadd.f32 %v762_v14, %v760_v20  ;;  %v775_v28 = vadd.f32 %v763_v19, %v761_v22 }
 0x1d1   : > { %v503_v7 = vpop.xlane.xlu0 %502  ;;  %v744_v24 = vadd.f32 %v743_v15, %v742_v18  ;;  %v753_v29 = vadd.f32 %v752_v21, %v751_v23  ;;  %v807_v62 = vadd.f32 %v806_v51, %v805_v43  ;;  %v799_v57 = vrot.slane %v798_v58, 1 }
 0x1d2   : > { %v764_v13 = vmul.f32 %v1519_v8, %v503_v7  ;;  %v765_v16 = vmul.f32 %v1510_v4, %v503_v7  ;;  %v834_v14 = vrot.slane %v833_v53, 1  ;;  %v825_v15 = vrot.slane %v824_v9, 1 }
 0x1d3   : > { %v745_v32 = vrot.slane %v744_v24, 4  ;;  %v754_v35 = vrot.slane %v753_v29, 4  ;;  %v808_v12 = vrot.slane %v807_v62, 1  ;;  %v800_v18 = vadd.f32 %v799_v57, %v798_v58 }
 0x1d4   : > { %v767_v25 = vsel %vm300_vm5, %v764_v13, 0.0  ;;  %v776_v27 = vsel %vm300_vm5, %v765_v16, 0.0 }
 0x1d5   : > { %v768_v30 = vadd.f32 %v767_v25, %v766_v26  ;;  %v777_v33 = vadd.f32 %v776_v27, %v775_v28  ;;  %v746_v41 = vadd.f32 %v745_v32, %v744_v24  ;;  %v755_v44 = vadd.f32 %v754_v35, %v753_v29 }
 0x1d6   : > { %v809_v24 = vadd.f32 %v808_v12, %v807_v62  ;;  %v826_v26 = vadd.f32 %v825_v15, %v824_v9  ;;  %v835_v27 = vadd.f32 %v834_v14, %v833_v53 }
 0x1d7   : > { %v769_v39 = vrot.slane %v768_v30, 4  ;;  %v778_v42 = vrot.slane %v777_v33, 4  ;;  %v747_v49 = vrot.slane %v746_v41, 2  ;;  %v756_v52 = vrot.slane %v755_v44, 2 }
 0x1d9   : > { %v770_v47 = vadd.f32 %v769_v39, %v768_v30  ;;  %v779_v50 = vadd.f32 %v778_v42, %v777_v33  ;;  %v748_v59 = vadd.f32 %v747_v49, %v746_v41  ;;  %v757_v7 = vadd.f32 %v756_v52, %v755_v44 }
 0x1db   : > { %v771_v56 = vrot.slane %v770_v47, 2  ;;  %v780_v60 = vrot.slane %v779_v50, 2  ;;  %v749_v11 = vrot.slane %v748_v59, 1  ;;  %v758_v13 = vrot.slane %v757_v7, 1 }
 0x1dd   : > { %v772_v10 = vadd.f32 %v771_v56, %v770_v47  ;;  %v781_v61 = vadd.f32 %v780_v60, %v779_v50  ;;  %v750_v19 = vadd.f32 %v749_v11, %v748_v59  ;;  %v759_v25 = vadd.f32 %v758_v13, %v757_v7 }
 0x1df   : > { %v773_v16 = vrot.slane %v772_v10, 1  ;;  %v782_v20 = vrot.slane %v781_v61, 1  ;;  %v836_v30 = vmul.f32 %v800_v18, %v750_v19  ;;  %v837_v42 = vmul.f32 %v809_v24, %v759_v25 }
 0x1e1   : > { %v774_v28 = vadd.f32 %v773_v16, %v772_v10  ;;  %v783_v31 = vadd.f32 %v782_v20, %v781_v61 }
 0x1e3   : > { %v844_v46 = vmul.f32 %v826_v26, %v774_v28  ;;  %v845_v50 = vmul.f32 %v835_v27, %v783_v31  ;;  %v1240_v27 = vmov 1966171168  }
 0x1e4   : > { %v858_v28 = vunpack.c.l.s4 %v1240_v27 }
 0x1e5   : > { %v846_v60 = vmax.f32 %v844_v46, 1e-16  ;;  %v847_v9 = vmax.f32 %v845_v50, 1e-16 }
 0x208   : > { %v579_v17 = vpop.f32.mrb[6].mxu0 }
 0x209   : > { %v671_v21 = vpop.f32.mrb[6].mxu1  ;;  %v581_v22 = vpop.f32.mrb[7].mxu0  ;;  %v688_v32 = vmul.f32 %v1491_v0, %v579_v17 }
 0x20a   : > { %v673_v23 = vpop.f32.mrb[7].mxu1  ;;  %v712_v36 = vmul.f32 %v1491_v0, %v671_v21  ;;  %v689_v37 = vmul.f32 %v1486_v63, %v581_v22 }
 0x20b   : > { %v713_v43 = vmul.f32 %v1486_v63, %v673_v23  ;;  %v839_v63 = vmax.f32 %v837_v42, 1e-16 }
 0x20c   : > { %v585_v29 = vpop.f32.mrb[8].mxu0 }
 0x20d   : > { %v690_v33 = vmul.f32 %v1505_v3, %v585_v29  ;;  %v677_v34 = vpop.f32.mrb[8].mxu1  ;;  %v587_v35 = vpop.f32.mrb[9].mxu0 }
 0x20e   : > { %v714_v39 = vmul.f32 %v1505_v3, %v677_v34  ;;  %v691_v40 = vmul.f32 %v1500_v2, %v587_v35  ;;  %v679_v41 = vpop.f32.mrb[9].mxu1  ;;  %v838_v3 = vmax.f32 %v836_v30, 1e-16 }
 0x20f   : > { %v694_v44 = vadd.f32 %v690_v33, %v688_v32  ;;  %v715_v45 = vmul.f32 %v1500_v2, %v679_v41  ;;  %v859_v41 = vunpack.c.0.s8 %v858_v28 }
 0x210   : > { %v718_v47 = vadd.f32 %v714_v39, %v712_v36  ;;  %v703_v48 = vadd.f32 %v691_v40, %v689_v37  ;;  %v591_v49 = vpop.f32.mrb[10].mxu0  ;;  %1126 = vrsqrt.f32 %v838_v3 }
 0x211   : > { %v727_v51 = vadd.f32 %v715_v45, %v713_v43  ;;  %v692_v0 = vmul.f32 %v1519_v8, %v591_v49  ;;  %v683_v52 = vpop.f32.mrb[10].mxu1  ;;  %v593_v54 = vpop.f32.mrb[11].mxu0  ;;  %1128 = vrsqrt.f32 %v839_v63 }
 0x212   : > { %v716_v55 = vmul.f32 %v1519_v8, %v683_v52  ;;  %v693_v56 = vmul.f32 %v1510_v4, %v593_v54  ;;  %v685_v58 = vpop.f32.mrb[11].mxu1  ;;  %1130 = vrsqrt.f32 %v846_v60 }
 0x213   : > { %v695_v59 = vsel %vm300_vm5, %v692_v0, 0.0  ;;  %v717_v2 = vmul.f32 %v1510_v4, %v685_v58  ;;  %1132 = vrsqrt.f32 %v847_v9 }
 0x214   : > { %v696_v62 = vadd.f32 %v695_v59, %v694_v44  ;;  %v719_v7 = vsel %vm300_vm5, %v716_v55, 0.0  ;;  %v704_v53 = vsel %vm300_vm5, %v693_v56, 0.0 }
 0x215   : > { %v720_v10 = vadd.f32 %v719_v7, %v718_v47  ;;  %v705_v57 = vadd.f32 %v704_v53, %v703_v48  ;;  %v728_v11 = vsel %vm300_vm5, %v717_v2, 0.0  ;;  %v862_v48 = vsub.s32 %v859_v41, %v1419_v1 }
 0x216   : > { %v697_v8 = vrot.slane %v696_v62, 4  ;;  %v729_v61 = vadd.f32 %v728_v11, %v727_v51 }
 0x217   : > { %v721_v12 = vrot.slane %v720_v10, 4  ;;  %v706_v13 = vrot.slane %v705_v57, 4 }
 0x218   : > { %v698_v14 = vadd.f32 %v697_v8, %v696_v62  ;;  %v730_v4 = vrot.slane %v729_v61, 4 }
 0x219   : > { %v722_v15 = vadd.f32 %v721_v12, %v720_v10  ;;  %v707_v16 = vadd.f32 %v706_v13, %v705_v57 }
 0x21a   : > { %v699_v17 = vrot.slane %v698_v14, 2  ;;  %v731_v18 = vadd.f32 %v730_v4, %v729_v61  ;;  %v1127_v31 = vpop.eup %1126 }
 0x21b   : > { %v723_v19 = vrot.slane %v722_v15, 2  ;;  %v708_v20 = vrot.slane %v707_v16, 2  ;;  %v1129_v34 = vpop.eup %1128 }
 0x21c   : > { %v700_v21 = vadd.f32 %v699_v17, %v698_v14  ;;  %v732_v22 = vrot.slane %v731_v18, 2  ;;  %v1131_v37 = vpop.eup %1130 }
 0x21d   : > { %v724_v23 = vadd.f32 %v723_v19, %v722_v15  ;;  %v709_v24 = vadd.f32 %v708_v20, %v707_v16  ;;  %v1133_v42 = vpop.eup %1132 }
 0x21e   : > { %v701_v25 = vrot.slane %v700_v21, 1  ;;  %v733_v26 = vadd.f32 %v732_v22, %v731_v18 }
 0x21f   : > { %v725_v29 = vrot.slane %v724_v23, 1  ;;  %v710_v30 = vrot.slane %v709_v24, 1 }
 0x220   : > { %v702_v32 = vadd.f32 %v701_v25, %v700_v21  ;;  %v734_v33 = vrot.slane %v733_v26, 1 }
 0x221   : > { %v726_v35 = vadd.f32 %v725_v29, %v724_v23  ;;  %v711_v36 = vadd.f32 %v710_v30, %v709_v24 }
 0x222   : > { %v842_v39 = vmul.f32 %v1127_v31, %v702_v32  ;;  %v735_v40 = vadd.f32 %v734_v33, %v733_v26 }
 0x223   : > { %v850_v43 = vmul.f32 %v1131_v37, %v726_v35  ;;  %v843_v44 = vmul.f32 %v1129_v34, %v711_v36 }
 0x224   : > { %v851_v45 = vmul.f32 %v1133_v42, %v735_v40 }
 0x225   : > { %v852_v46 = vsub.f32 %v842_v39, %v850_v43 }
 0x226   : > { %v853_v47 = vsub.f32 %v843_v44, %v851_v45 }
 0x228   : > { %v856_v49 = vcombine.low %v852_v46, %v853_v47 }
 0x22a   : > { %v863_v50 = vrot.slane %v856_v49, %v862_v48 }
 0x22c   : > { %v870_v51 = vrot.slane %v863_v50, %v862_v48 }
 0x22e   : > { %v872_v0 = vsel %vm293_vm11, %v870_v51, 0.0 }
 0x22f   : > { %v873_v52 = vmul.f32 %v872_v0, %v872_v0 }
 0x231   : > { %v878_v54 = vrot.slane %v873_v52, %v267_v6  ;;  %v882_v3 = vrot.slane %v873_v52, %v271_v5 }
 0x233   : > { %v886_v55 = vsel %vm885_vm12, %v878_v54, 0.0  ;;  %v887_v56 = vsel %vm885_vm12, %v882_v3, 0.0 }
 0x234   : > { %v888_v58 = vadd.f32 %v887_v56, %v886_v55 }
 0x236   : > { %889 = vadd.xlane.f32.xlu1 %v888_v58 }
 0x2c3   : > { %v890_v63 = vpop.xlane.xlu1 %889 }
 0x2c4   : > { %v891_v38 = vrot.slane %v890_v63, 4 }
 0x2c6   : > { %v892_v59 = vadd.f32 %v891_v38, %v890_v63 }
 0x2c8   : > { %v893_v2 = vrot.slane %v892_v59, 2 }
 0x2ca   : > { %v894_v60 = vadd.f32 %v893_v2, %v892_v59 }
 0x2cc   : > { %v895_v62 = vrot.slane %v894_v60, 1 }
 0x2ce   : > { %v896_v7 = vadd.f32 %v895_v62, %v894_v60 }
 0x2d0   : > { %1069 = vpush %v896_v7 }
 0x301   : > { %s1070_s15 = spop %1069 }
 0x302   : > { %v898_v1 = vstv %s1070_s15 }
 0x303   : > { %901 = vst.msk [vmem:[%s243_s27] sm:$0x1] %vm900_vm13, %v898_v1 }
 0x304 PF: > { %p16_p11 = scmp.ge.s32.totalorder %s1283_s17, 4   ;;  %s1641_s12 = smov %s1224_s13 }
 0x305   : > { %s1642_s13 = smov %s1228_s14  ;;  %s1643_s14 = smov %s1293_s20 }
 0x306   : > { %s1644_s15 = smov %s1283_s17  ;;  %18 = sbr.rel (!%p16_p11) target bundleno = 5 (0x5), region = 88 }
 0x30d   :  { %919 = vsyncpa [#allocation3], 1 }
 0x30e   :  { %921 = vsyncpa [#allocation3 + $0x1], 1 }
 0x30f   :  { %922 = vsyncpa [#allocation5], 1 }
 0x310   :  { %924 = vsyncpa [#allocation5 + $0x1], 1 }

</bundles_post_ra>
